<compile_context>
chip_gen: v5e
topology: v5e:2x2
jax: 0.10.0
libtpu: 0.0.40
codegen_flags: <defaults>
</compile_context>

<pallas_src>
import jax
import jax.numpy as jnp
from jax.experimental import pallas as pl
from jax.experimental.pallas import tpu as pltpu

# Wrapped-module dimensions (PyTorch Linear: (out_features, in_features)).
D_IN, HID, D_OUT = 32, 64, 32

LANE = 128           # lane-dense pad target for every last axis
SUBLANE_BF16 = 16    # bf16 vregs pack [16, 128] -> batch tile multiple of 16
MAX_TB = 512         # batch-tile cap; ~85% of HBM roofline territory, tiny VMEM
                     # footprint (512x128 f32 = 256 KiB/tile) -> fits v7x's
                     # smaller 64 MiB VMEM without raising vmem_limit_bytes.


def _round_up(n, m):
    return ((n + m - 1) // m) * m


D_IN_P = _round_up(D_IN, LANE)     # 128
HID_P = _round_up(HID, LANE)       # 128
D_OUT_P = _round_up(D_OUT, LANE)   # 128


def _ddp_mlp_kernel(x_ref, w1_ref, b1_ref, w2_ref, b2_ref, o_ref):
    """One batch tile of ReLU(x @ W1 + b1) @ W2 + b2.

    MXU is fed bf16 operands with f32 accumulation; all elementwise work
    (bias add, ReLU) stays in f32 on the accumulator (VPU has slack here).
    """
    x = x_ref[...].astype(jnp.bfloat16)
    h = jnp.dot(x, w1_ref[...], preferred_element_type=jnp.float32)
    h = jnp.maximum(h + b1_ref[...], 0.0)
    y = jnp.dot(h.astype(jnp.bfloat16), w2_ref[...],
                preferred_element_type=jnp.float32)
    o_ref[...] = (y + b2_ref[...]).astype(o_ref.dtype)


def prepare_ddp_params(w1, b1, w2, b2):
    """One-time layout plumbing (hoisted out of the per-call forward):
    PyTorch (out, in) weights -> [in, out], zero-padded lane-dense, cast to
    bf16 for the MXU; biases -> (1, padded) f32 rows.

    Zero padding is forward-exact: padded H columns are 0 through ReLU and
    contribute nothing to the second matmul; padded D_out columns are sliced off.
    """
    w1t = jnp.zeros((D_IN_P, HID_P), jnp.bfloat16)
    w1t = w1t.at[:D_IN, :HID].set(w1.T.astype(jnp.bfloat16))
    w2t = jnp.zeros((HID_P, D_OUT_P), jnp.bfloat16)
    w2t = w2t.at[:HID, :D_OUT].set(w2.T.astype(jnp.bfloat16))
    b1r = jnp.zeros((1, HID_P), jnp.float32).at[:, :HID].set(b1.astype(jnp.float32))
    b2r = jnp.zeros((1, D_OUT_P), jnp.float32).at[:, :D_OUT].set(b2.astype(jnp.float32))
    return w1t, b1r, w2t, b2r


@jax.jit
def ddp_forward(x, params):
    """Forward of DistributedDataParallel(MLP).

    x: (B, 32) float32; params: output of prepare_ddp_params().
    Returns (B, 32) float32.
    """
    # TODO(synk): dist.broadcast of params from rank 0 and the 0.1x
    # gradient-multiply hook are init/backward-only; no forward equivalent.
    w1t, b1r, w2t, b2r = params
    B = x.shape[0]

    tb = min(MAX_TB, _round_up(B, SUBLANE_BF16))
    b_pad = _round_up(B, tb)
    grid = (b_pad // tb,)

    # Zero-pad batch rows (sliced off below) and D_in lanes (weight rows are 0).
    x_p = jnp.zeros((b_pad, D_IN_P), jnp.float32).at[:B, :D_IN].set(
        x.astype(jnp.float32))

    flops = 2 * b_pad * (D_IN_P * HID_P + HID_P * D_OUT_P)
    bytes_accessed = (x_p.size * 4 + w1t.size * 2 + w2t.size * 2
                      + b1r.size * 4 + b2r.size * 4 + b_pad * D_OUT_P * 4)

    out = pl.pallas_call(
        _ddp_mlp_kernel,
        out_shape=jax.ShapeDtypeStruct((b_pad, D_OUT_P), jnp.float32),
        grid=grid,
        in_specs=[
            # batch-tiled activations
            pl.BlockSpec((tb, D_IN_P), lambda i: (i, 0)),
            # weights / biases: constant block index -> VMEM-resident across steps
            pl.BlockSpec((D_IN_P, HID_P), lambda i: (0, 0)),
            pl.BlockSpec((1, HID_P), lambda i: (0, 0)),
            pl.BlockSpec((HID_P, D_OUT_P), lambda i: (0, 0)),
            pl.BlockSpec((1, D_OUT_P), lambda i: (0, 0)),
        ],
        out_specs=pl.BlockSpec((tb, D_OUT_P), lambda i: (i, 0)),
        compiler_params=pltpu.CompilerParams(
            # batch tiles are independent -> shard across TCs on v7x megacore
            dimension_semantics=("parallel",),
        ),
        cost_estimate=pl.CostEstimate(
            flops=flops, transcendentals=0, bytes_accessed=bytes_accessed),
    )(x_p, w1t, b1r, w2t, b2r)

    return out[:B, :D_OUT]


def _torch_linear_init(key, out_features, in_features):
    """Deterministic emulation of PyTorch nn.Linear default init
    (uniform in [-1/sqrt(fan_in), 1/sqrt(fan_in)])."""
    kw, kb = jax.random.split(key)
    bound = 1.0 / jnp.sqrt(jnp.float32(in_features))
    w = jax.random.uniform(kw, (out_features, in_features),
                           dtype=jnp.float32, minval=-bound, maxval=bound)
    b = jax.random.uniform(kb, (out_features,),
                           dtype=jnp.float32, minval=-bound, maxval=bound)
    return w, b


def _reference_forward(x, w1, b1, w2, b2):
    """Pure-JAX reference matching the kernel's bf16-operand / f32-accumulate
    numerics."""
    r = lambda a: a.astype(jnp.bfloat16).astype(jnp.float32)
    h = jnp.maximum(r(x) @ r(w1).T + b1, 0.0)
    return r(h) @ r(w2).T + b2


if __name__ == "__main__":
    B = 8

    key = jax.random.PRNGKey(0)
    k_x, k_l1, k_l2 = jax.random.split(key, 3)

    x = jax.random.normal(k_x, (B, D_IN), dtype=jnp.float32)
    w1, b1 = _torch_linear_init(k_l1, HID, D_IN)
    w2, b2 = _torch_linear_init(k_l2, D_OUT, HID)

    params = prepare_ddp_params(w1, b1, w2, b2)   # one-time layout work

    out = ddp_forward(x, params)
    out = jax.block_until_ready(out)

    ref = _reference_forward(x, w1, b1, w2, b2)
    assert out.shape == (B, D_OUT), out.shape
    assert jnp.allclose(out, ref, atol=1e-4, rtol=1e-4), "mismatch vs reference"

    print("KERNEL_OK")
</pallas_src>

<mosaic_0001>
module attributes {stable_mosaic.version = 11 : i64} {
  func.func @_ddp_mlp_kernel(%arg0: i32, %arg1: memref<16x128xf32, #tpu.memory_space<vmem>>, %arg2: memref<128x128xbf16, #tpu.memory_space<vmem>>, %arg3: memref<1x128xf32, #tpu.memory_space<vmem>>, %arg4: memref<128x128xbf16, #tpu.memory_space<vmem>>, %arg5: memref<1x128xf32, #tpu.memory_space<vmem>>, %arg6: memref<16x128xf32, #tpu.memory_space<vmem>>) attributes {dimension_semantics = [#tpu.dimension_semantics<parallel>], iteration_bounds = array<i64: 1>, scalar_prefetch = 0 : i64, scratch_operands = 0 : i64, tpu.core_type = #tpu.core_type<tc>, window_params = [{transform_indices = @transform_0, window_bounds = array<i64: 16, 128>}, {pipeline_mode = #tpu.pipeline_mode<synchronous>, transform_indices = @transform_1, window_bounds = array<i64: 128, 128>}, {pipeline_mode = #tpu.pipeline_mode<synchronous>, transform_indices = @transform_2, window_bounds = array<i64: 1, 128>}, {pipeline_mode = #tpu.pipeline_mode<synchronous>, transform_indices = @transform_3, window_bounds = array<i64: 128, 128>}, {pipeline_mode = #tpu.pipeline_mode<synchronous>, transform_indices = @transform_4, window_bounds = array<i64: 1, 128>}, {transform_indices = @transform_5, window_bounds = array<i64: 16, 128>}]} {
    %c0 = arith.constant 0 : index
    %c0_0 = arith.constant 0 : index
    %0 = vector.load %arg1[%c0, %c0_0] : memref<16x128xf32, #tpu.memory_space<vmem>>, vector<16x128xf32>
    %1 = arith.truncf %0 : vector<16x128xf32> to vector<16x128xbf16>
    %c0_1 = arith.constant 0 : index
    %c0_2 = arith.constant 0 : index
    %2 = vector.load %arg2[%c0_1, %c0_2] : memref<128x128xbf16, #tpu.memory_space<vmem>>, vector<128x128xbf16>
    %cst = arith.constant dense<0.000000e+00> : vector<16x128xf32>
    %3 = tpu.matmul %1, %2, %cst {dimension_numbers = #tpu.dot_dimension_numbers<[1], [0], [0], [1], [0, 0, 1, 1], [], []>} : vector<16x128xbf16>, vector<128x128xbf16>, vector<16x128xf32> -> vector<16x128xf32>
    %c0_3 = arith.constant 0 : index
    %c0_4 = arith.constant 0 : index
    %4 = vector.load %arg3[%c0_3, %c0_4] : memref<1x128xf32, #tpu.memory_space<vmem>>, vector<1x128xf32>
    %5 = vector.broadcast %4 : vector<1x128xf32> to vector<16x128xf32>
    %6 = arith.addf %3, %5 : vector<16x128xf32>
    %cst_5 = arith.constant 0.000000e+00 : f32
    %7 = vector.broadcast %cst_5 : f32 to vector<16x128xf32>
    %8 = arith.maximumf %6, %7 : vector<16x128xf32>
    %9 = arith.truncf %8 : vector<16x128xf32> to vector<16x128xbf16>
    %c0_6 = arith.constant 0 : index
    %c0_7 = arith.constant 0 : index
    %10 = vector.load %arg4[%c0_6, %c0_7] : memref<128x128xbf16, #tpu.memory_space<vmem>>, vector<128x128xbf16>
    %cst_8 = arith.constant dense<0.000000e+00> : vector<16x128xf32>
    %11 = tpu.matmul %9, %10, %cst_8 {dimension_numbers = #tpu.dot_dimension_numbers<[1], [0], [0], [1], [0, 0, 1, 1], [], []>} : vector<16x128xbf16>, vector<128x128xbf16>, vector<16x128xf32> -> vector<16x128xf32>
    %c0_9 = arith.constant 0 : index
    %c0_10 = arith.constant 0 : index
    %12 = vector.load %arg5[%c0_9, %c0_10] : memref<1x128xf32, #tpu.memory_space<vmem>>, vector<1x128xf32>
    %13 = vector.broadcast %12 : vector<1x128xf32> to vector<16x128xf32>
    %14 = arith.addf %11, %13 : vector<16x128xf32>
    %c0_11 = arith.constant 0 : index
    %c0_12 = arith.constant 0 : index
    %15 = vector.load %arg6[%c0_11, %c0_12] : memref<16x128xf32, #tpu.memory_space<vmem>>, vector<16x128xf32>
    tpu.vector_store %arg6[%c0_11, %c0_12], %14 {strides = array<i32>} : memref<16x128xf32, #tpu.memory_space<vmem>>, vector<16x128xf32>,
    return
  }
  func.func @transform_0(%arg0: i32) -> (i32, i32) {
    %c0_i32 = arith.constant 0 : i32
    %c0_i32_0 = arith.constant 0 : i32
    return %arg0, %c0_i32 : i32, i32
  }
  func.func @transform_1(%arg0: i32) -> (i32, i32) {
    %c0_i32 = arith.constant 0 : i32
    %c0_i32_0 = arith.constant 0 : i32
    %c0_i32_1 = arith.constant 0 : i32
    return %c0_i32, %c0_i32_0 : i32, i32
  }
  func.func @transform_2(%arg0: i32) -> (i32, i32) {
    %c0_i32 = arith.constant 0 : i32
    %c0_i32_0 = arith.constant 0 : i32
    %c0_i32_1 = arith.constant 0 : i32
    return %c0_i32, %c0_i32_0 : i32, i32
  }
  func.func @transform_3(%arg0: i32) -> (i32, i32) {
    %c0_i32 = arith.constant 0 : i32
    %c0_i32_0 = arith.constant 0 : i32
    %c0_i32_1 = arith.constant 0 : i32
    return %c0_i32, %c0_i32_0 : i32, i32
  }
  func.func @transform_4(%arg0: i32) -> (i32, i32) {
    %c0_i32 = arith.constant 0 : i32
    %c0_i32_0 = arith.constant 0 : i32
    %c0_i32_1 = arith.constant 0 : i32
    return %c0_i32, %c0_i32_0 : i32, i32
  }
  func.func @transform_5(%arg0: i32) -> (i32, i32) {
    %c0_i32 = arith.constant 0 : i32
    %c0_i32_0 = arith.constant 0 : i32
    return %arg0, %c0_i32 : i32, i32
  }
}

</mosaic_0001>

<bundles_post_ra>
// kernel: ddp_forward.1
= control target key start
LH: loop header
LB: loop body
LE: loop exit
PB: predicated region body
PF: predicated region fallthrough
CT: control target
= control target key end

     0   :  { %10 = vsyncpa [#allocation3], 0  ;;  %s426_s0 = inlined_call_operand.vmem [shape: f32[16,128], index: 0, kind: input, shape index: {}]   ;;  %s427_s1 = inlined_call_operand.hbm [shape: bf16[128,128], index: 1, kind: input, shape index: {}]   ;;  %s428_s2 = inlined_call_operand.vmem [shape: f32[1,128], index: 2, kind: input, shape index: {}]   ;;  %s429_s3 = inlined_call_operand.hbm [shape: bf16[128,128], index: 3, kind: input, shape index: {}]   ;;  %s430_s4 = inlined_call_operand.vmem [shape: f32[1,128], index: 4, kind: input, shape index: {}]   ;;  %s431_s5 = inlined_call_operand.vmem [shape: f32[16,128], index: 5, kind: output, shape index: {}]  }
   0x1   :  { %s18_s20 = sshll.u32 %s427_s1, 4  ;;  %s19_s20 = int_to_ptr.hbm [resolvable:$true] %s18_s20 }
   0x2   :  { %11 = vsyncpa [#allocation5], 0  ;;  %s368_s21 = smov [#allocation2]   ;;  %s33_s25 = sshll.u32 %s429_s3, 4  ;;  %s34_s25 = int_to_ptr.hbm [resolvable:$true] %s33_s25 }
   0x3   :  { %s20_s22 = sshll.u32 %s368_s21, 4  ;;  %s369_s26 = smov 64   ;;  %s21_s22 = int_to_ptr.vmem [resolvable:$true] %s20_s22 }
   0x4   :  { %s370_s27 = smov 4   ;;  %s371_s28 = smov [#allocation4]  }
   0x5   :  { %26 = dma.hbm_to_vmem [thread:$0]  %s19_s20, 1024, %s21_s22, [#allocation3], %s369_s26, %s369_s26, %s370_s27  }
   0x6   :  { %s35_s29 = sshll.u32 %s371_s28, 4  ;;  %s36_s29 = int_to_ptr.vmem [resolvable:$true] %s35_s29 }
   0x7   :  { %41 = dma.hbm_to_vmem [thread:$0]  %s34_s25, 1024, %s36_s29, [#allocation5], %s369_s26, %s369_s26, %s370_s27  }
   0x8   :  { %364 = dma.done.wait [#allocation3], 1024  }
   0x9   :  { %365 = vsyncadd [#allocation3], 4294966272 }
   0xa   :  { %366 = dma.done.wait [#allocation5], 1024  }
   0xb   :  { %367 = vsyncadd [#allocation5], 4294966272  ;;  %v301_v0 = vld [vmem:[#allocation2 + $0x38] sm:$0xff]  ;;  %v300_v1 = vld [vmem:[#allocation2 + $0x30] sm:$0xff] }
   0xc   :  { %123 = vmatpush.bf16.msra.mxu0 %v301_v0  ;;  %v309_v2 = vld [vmem:[#allocation4 + $0x38] sm:$0xff]  ;;  %v308_v3 = vld [vmem:[#allocation4 + $0x30] sm:$0xff]  ;;  %v299_v4 = vld [vmem:[#allocation2 + $0x28] sm:$0xff] }
   0xd   :  { %208 = vmatpush.bf16.msra.mxu1 %v309_v2  ;;  %v307_v5 = vld [vmem:[#allocation4 + $0x28] sm:$0xff]  ;;  %v298_v6 = vld [vmem:[#allocation2 + $0x20] sm:$0xff]  ;;  %v297_v8 = vld [vmem:[#allocation2 + $0x18] sm:$0xff] }
   0xe   :  { %v306_v7 = vld [vmem:[#allocation4 + $0x20] sm:$0xff]  ;;  %v296_v9 = vld [vmem:[#allocation2 + $0x10] sm:$0xff]  ;;  %v295_v10 = vld [vmem:[#allocation2 + $0x8] sm:$0xff] }
   0xf   :  { %v294_v11 = vld [vmem:[#allocation2] sm:$0xff]  ;;  %v53_v13 = vld [vmem:[%s426_s0 + $0x8] sm:$0xff]  ;;  %v305_v15 = vld [vmem:[#allocation4 + $0x18] sm:$0xff] }
  0x10   :  { %124 = vmatpush.bf16.msra.mxu0 %v300_v1  ;;  %v52_v12 = vld [vmem:[%s426_s0] sm:$0xff]  ;;  %v304_v16 = vld [vmem:[#allocation4 + $0x10] sm:$0xff]  ;;  %v303_v17 = vld [vmem:[#allocation4 + $0x8] sm:$0xff] }
  0x11   :  { %209 = vmatpush.bf16.msra.mxu1 %v308_v3  ;;  %v54_v14 = vpack.c.bf16 %v53_v13, %v52_v12  ;;  %v302_v18 = vld [vmem:[#allocation4] sm:$0xff] }
  0x12   :  { %v314_v20 = vld [vmem:[%s428_s2] ss:$0 sm:$0xff] }
  0x13   :  { %v315_v27 = vld [vmem:[%s430_s4] ss:$0 sm:$0xff] }
  0x14   :  { %125 = vmatpush.bf16.msra.mxu0 %v299_v4 }
  0x15   :  { %210 = vmatpush.bf16.msra.mxu1 %v307_v5 }
  0x18   :  { %126 = vmatpush.bf16.msra.mxu0 %v298_v6 }
  0x19   :  { %211 = vmatpush.bf16.msra.mxu1 %v306_v7 }
  0x1c   :  { %127 = vmatpush.bf16.msra.mxu0 %v297_v8 }
  0x1d   :  { %212 = vmatpush.bf16.msra.mxu1 %v305_v15 }
  0x20   :  { %128 = vmatpush.bf16.msra.mxu0 %v296_v9 }
  0x21   :  { %213 = vmatpush.bf16.msra.mxu1 %v304_v16 }
  0x24   :  { %129 = vmatpush.bf16.msra.mxu0 %v295_v10 }
  0x25   :  { %214 = vmatpush.bf16.msra.mxu1 %v303_v17 }
  0x28   :  { %130 = vmatpush.bf16.msra.mxu0 %v294_v11 }
  0x29   :  { %215 = vmatpush.bf16.msra.mxu1 %v302_v18 }
  0x2b   :  { %131 = vmatmul.bf16.vlgmr.msra.gmra.mxu0 %v54_v14 }
  0xa8   :  { %v132_v19 = vpop.f32.mrf.mxu0 }
  0xa9   :  { %v133_v21 = vadd.f32 %v314_v20, %v132_v19 }
  0xab   :  { %v137_v24 = vmax.f32 %v133_v21, 0.0 }
  0xb0   :  { %v134_v22 = vpop.f32.mrf.mxu0 }
  0xb1   :  { %v135_v23 = vadd.f32 %v314_v20, %v134_v22 }
  0xb3   :  { %v138_v25 = vmax.f32 %v135_v23, 0.0 }
  0xb5   :  { %v139_v26 = vpack.c.bf16 %v138_v25, %v137_v24 }
  0xb7   :  { %216 = vmatmul.bf16.vlgmr.msra.gmra.mxu1 %v139_v26 }
 0x134   :  { %v217_v28 = vpop.f32.mrf.mxu1 }
 0x135   :  { %v218_v29 = vadd.f32 %v315_v27, %v217_v28 }
 0x137   :  { %222 = vst [vmem:[%s431_s5] sm:$0xff] %v218_v29 }
 0x13c   :  { %v219_v30 = vpop.f32.mrf.mxu1 }
 0x13d   :  { %v220_v31 = vadd.f32 %v315_v27, %v219_v30 }
 0x13f   :  { %223 = vst [vmem:[%s431_s5 + $0x8] sm:$0xff] %v220_v31 }
 0x140   :  { %228 = vsyncpa [#allocation3], 1 }
 0x141   :  { %229 = vsyncpa [#allocation5], 1 }

</bundles_post_ra>
